<compile_context>
chip_gen: v7x
topology: tpu7x:2x2x1
jax: 0.10.0
libtpu: 0.0.40
codegen_flags: <defaults>
</compile_context>

<pallas_src>
import functools

import jax
import jax.numpy as jnp
from jax.experimental import pallas as pl
from jax.experimental.pallas import tpu as pltpu


def _frn2d_kernel(eps, inv_hw, x_ref, g_ref, b_ref, o_ref):
    # x_ref block: (Nb, Cb, T) -- full (zero-padded) spatial extent on lanes.
    x = x_ref[...].astype(jnp.float32)
    # nu^2 = mean(x^2) over spatial positions; zero padding does not change the
    # sum, so divide by the true H*W via inv_hw.
    nu2 = jnp.sum(x * x, axis=-1, keepdims=True) * inv_hw          # (Nb, Cb, 1)
    scale = jax.lax.rsqrt(nu2 + eps)                               # EUP rsqrt
    g = g_ref[...].astype(jnp.float32)                             # (1, Cb, 1)
    b = b_ref[...].astype(jnp.float32)                             # (1, Cb, 1)
    # Fold gamma into the per-channel scale: one full-width mul + one add.
    o_ref[...] = (x * (scale * g) + b).astype(o_ref.dtype)


def _vmem_limit_bytes():
    # v7x has 64 MiB physical VMEM per TensorCore, v5e/v6e have 128 MiB.
    cap = 64 * 1024 * 1024  # conservative default
    try:
        info = pltpu.get_tpu_info()
        cap = int(getattr(info, "vmem_capacity_bytes", cap))
    except Exception:
        pass
    # Leave headroom for compiler scratch; never request more than 96 MiB.
    return min((cap * 3) // 4, 96 * 1024 * 1024)


def frn2d(x, gamma, beta, eps=1e-6):
    """FRN2d forward (channel_last=False / NCHW), matching the PyTorch module."""
    # TODO(synk): channel_last=True layout of FRN2d is not implemented (NCHW only).
    N, C, H, W = x.shape
    HW = H * W

    # Flatten spatial dims onto the lane axis; pad up to a multiple of 128 so
    # output stores stay unmasked (lane-dense vst).
    HW_pad = ((HW + 127) // 128) * 128
    x3 = x.reshape(N, C, HW)
    if HW_pad != HW:
        x3 = jnp.pad(x3, ((0, 0), (0, 0), (0, HW_pad - HW)))

    g3 = gamma.reshape(1, C, 1).astype(jnp.float32)
    b3 = beta.reshape(1, C, 1).astype(jnp.float32)

    # ---- generation-aware tile sizing (memory bound: go as big as VMEM allows)
    vmem_limit = _vmem_limit_bytes()
    # double-buffered input + output blocks (~4x) plus f32 intermediates -> /8
    block_budget = max(vmem_limit // 8, 1 << 20)
    bytes_per_chan = HW_pad * 4  # budget in f32 (conservative for bf16 inputs)

    if C * bytes_per_chan <= block_budget:
        Cb = C
    else:
        # largest multiple of 8 that divides C and fits the budget
        Cb = 0
        for cand in range(8, C, 8):
            if C % cand == 0 and cand * bytes_per_chan <= block_budget:
                Cb = cand
        if Cb == 0:
            Cb = 8 if C % 8 == 0 else C  # rare fallback (huge HW / odd C)

    Nb = 1
    if Cb == C:
        # Small images / few channels: fold several batch items into one block
        # so each grid step stays well above the ~0.35 us step-overhead floor.
        for cand in range(1, N + 1):
            if N % cand == 0 and cand * C * bytes_per_chan <= block_budget:
                Nb = cand

    grid = (N // Nb, C // Cb)

    kernel = functools.partial(_frn2d_kernel, float(eps), 1.0 / float(HW))

    cost = pl.CostEstimate(
        flops=3 * N * C * HW,
        transcendentals=N * C,
        bytes_accessed=2 * N * C * HW * x.dtype.itemsize + 2 * C * 4,
    )

    out3 = pl.pallas_call(
        kernel,
        out_shape=jax.ShapeDtypeStruct((N, C, HW_pad), x.dtype),
        grid_spec=pltpu.PrefetchScalarGridSpec(
            num_scalar_prefetch=0,
            grid=grid,
            in_specs=[
                pl.BlockSpec((Nb, Cb, HW_pad), lambda n, c: (n, c, 0)),
                pl.BlockSpec((1, Cb, 1), lambda n, c: (0, c, 0)),
                pl.BlockSpec((1, Cb, 1), lambda n, c: (0, c, 0)),
            ],
            out_specs=pl.BlockSpec((Nb, Cb, HW_pad), lambda n, c: (n, c, 0)),
        ),
        compiler_params=pltpu.CompilerParams(
            dimension_semantics=("parallel", "parallel"),
            vmem_limit_bytes=vmem_limit,
        ),
        cost_estimate=cost,
    )(x3, g3, b3)

    if HW_pad != HW:
        out3 = out3[:, :, :HW]
    return out3.reshape(N, C, H, W)


if __name__ == "__main__":
    key = jax.random.PRNGKey(0)
    kx, kg, kb = jax.random.split(key, 3)

    N, C, H, W = 2, 4, 16, 16
    x = jax.random.normal(kx, (N, C, H, W), dtype=jnp.float32)
    gamma = 1.0 + 0.1 * jax.random.normal(kg, (1, C, 1, 1), dtype=jnp.float32)
    beta = 0.1 * jax.random.normal(kb, (1, C, 1, 1), dtype=jnp.float32)
    eps = 1e-6

    out = frn2d(x, gamma, beta, eps=eps)
    out = jax.block_until_ready(out)

    # Reference: mirrors the PyTorch FRN2d forward (channel_last=False).
    nu2 = jnp.mean(x * x, axis=(2, 3), keepdims=True)
    ref = x * jax.lax.rsqrt(nu2 + eps)
    ref = ref * gamma + beta

    assert out.shape == x.shape and out.dtype == x.dtype
    assert jnp.allclose(out, ref, atol=1e-5, rtol=1e-5), float(
        jnp.max(jnp.abs(out - ref))
    )

    print("KERNEL_OK")
</pallas_src>

<mosaic_0001>
module attributes {stable_mosaic.version = 11 : i64} {
  func.func @_frn2d_kernel(%arg0: i32, %arg1: i32, %arg2: memref<2x4x256xf32, #tpu.memory_space<vmem>>, %arg3: memref<1x4x1xf32, #tpu.memory_space<vmem>>, %arg4: memref<1x4x1xf32, #tpu.memory_space<vmem>>, %arg5: memref<2x4x256xf32, #tpu.memory_space<vmem>>) attributes {dimension_semantics = [#tpu.dimension_semantics<parallel>, #tpu.dimension_semantics<parallel>], iteration_bounds = array<i64: 1, 1>, scalar_prefetch = 0 : i64, scratch_operands = 0 : i64, tpu.core_type = #tpu.core_type<tc>, window_params = [{transform_indices = @transform_0, window_bounds = array<i64: 2, 4, 256>}, {transform_indices = @transform_1, window_bounds = array<i64: 1, 4, 1>}, {transform_indices = @transform_2, window_bounds = array<i64: 1, 4, 1>}, {transform_indices = @transform_3, window_bounds = array<i64: 2, 4, 256>}]} {
    %c0 = arith.constant 0 : index
    %c0_0 = arith.constant 0 : index
    %c0_1 = arith.constant 0 : index
    %0 = vector.load %arg2[%c0, %c0_0, %c0_1] : memref<2x4x256xf32, #tpu.memory_space<vmem>>, vector<2x4x256xf32>
    %1 = arith.mulf %0, %0 : vector<2x4x256xf32>
    %cst = arith.constant dense<0.000000e+00> : vector<2x4xf32>
    %2 = vector.multi_reduction <add>, %1, %cst [2] : vector<2x4x256xf32> to vector<2x4xf32>
    %3 = vector.shape_cast %2 : vector<2x4xf32> to vector<2x4x1xf32>
    %cst_2 = arith.constant 3.906250e-03 : f32
    %4 = vector.broadcast %cst_2 : f32 to vector<2x4x1xf32>
    %5 = arith.mulf %3, %4 : vector<2x4x1xf32>
    %cst_3 = arith.constant 9.99999997E-7 : f32
    %6 = vector.broadcast %cst_3 : f32 to vector<2x4x1xf32>
    %7 = arith.addf %5, %6 : vector<2x4x1xf32>
    %8 = math.rsqrt %7 : vector<2x4x1xf32>
    %c0_4 = arith.constant 0 : index
    %c0_5 = arith.constant 0 : index
    %c0_6 = arith.constant 0 : index
    %9 = vector.load %arg3[%c0_4, %c0_5, %c0_6] : memref<1x4x1xf32, #tpu.memory_space<vmem>>, vector<1x4x1xf32>
    %c0_7 = arith.constant 0 : index
    %c0_8 = arith.constant 0 : index
    %c0_9 = arith.constant 0 : index
    %10 = vector.load %arg4[%c0_7, %c0_8, %c0_9] : memref<1x4x1xf32, #tpu.memory_space<vmem>>, vector<1x4x1xf32>
    %11 = vector.broadcast %9 : vector<1x4x1xf32> to vector<2x4x1xf32>
    %12 = arith.mulf %8, %11 : vector<2x4x1xf32>
    %13 = vector.broadcast %12 : vector<2x4x1xf32> to vector<2x4x256xf32>
    %14 = arith.mulf %0, %13 : vector<2x4x256xf32>
    %15 = vector.broadcast %10 : vector<1x4x1xf32> to vector<2x4x256xf32>
    %16 = arith.addf %14, %15 : vector<2x4x256xf32>
    %c0_10 = arith.constant 0 : index
    %c0_11 = arith.constant 0 : index
    %c0_12 = arith.constant 0 : index
    %17 = vector.load %arg5[%c0_10, %c0_11, %c0_12] : memref<2x4x256xf32, #tpu.memory_space<vmem>>, vector<2x4x256xf32>
    tpu.vector_store %arg5[%c0_10, %c0_11, %c0_12], %16 {strides = array<i32>} : memref<2x4x256xf32, #tpu.memory_space<vmem>>, vector<2x4x256xf32>,
    return
  }
  func.func @transform_0(%arg0: i32, %arg1: i32) -> (i32, i32, i32) {
    %c0_i32 = arith.constant 0 : i32
    %c0_i32_0 = arith.constant 0 : i32
    return %arg0, %arg1, %c0_i32 : i32, i32, i32
  }
  func.func @transform_1(%arg0: i32, %arg1: i32) -> (i32, i32, i32) {
    %c0_i32 = arith.constant 0 : i32
    %c0_i32_0 = arith.constant 0 : i32
    %c0_i32_1 = arith.constant 0 : i32
    return %c0_i32, %arg1, %c0_i32_0 : i32, i32, i32
  }
  func.func @transform_2(%arg0: i32, %arg1: i32) -> (i32, i32, i32) {
    %c0_i32 = arith.constant 0 : i32
    %c0_i32_0 = arith.constant 0 : i32
    %c0_i32_1 = arith.constant 0 : i32
    return %c0_i32, %arg1, %c0_i32_0 : i32, i32, i32
  }
  func.func @transform_3(%arg0: i32, %arg1: i32) -> (i32, i32, i32) {
    %c0_i32 = arith.constant 0 : i32
    %c0_i32_0 = arith.constant 0 : i32
    return %arg0, %arg1, %c0_i32 : i32, i32, i32
  }
}

</mosaic_0001>

<bundles_post_ra>
// kernel: tpu_custom_call.1
= control target key start
LH: loop header
LB: loop body
LE: loop exit
PB: predicated region body
PF: predicated region fallthrough
CT: control target
= control target key end

     0   :  { %8 = vsyncpa [#allocation3], 0  ;;  %s241_s0 = inlined_call_operand.hbm [shape: f32[2,4,256], index: 0, kind: input, shape index: {}]   ;;  %s242_s1 = inlined_call_operand.vmem [shape: f32[1,4,1], index: 1, kind: input, shape index: {}]   ;;  %s243_s2 = inlined_call_operand.vmem [shape: f32[1,4,1], index: 2, kind: input, shape index: {}]   ;;  %s244_s3 = inlined_call_operand.hbm [shape: f32[2,4,256], index: 3, kind: output, shape index: {}]  }
   0x1   :  { %9 = vsyncpa [#allocation4], 0  ;;  %s179_s12 = smov [#allocation2]   ;;  %s131_s16 = scalar_lea.hbm %s241_s0, 256 }
   0x2   :  { %s15_s13 = sshll.u32 %s179_s12, 4  ;;  %p132_p0 = scmp.ne.s32.totalorder %s241_s0, %s131_s16  ;;  %s16_s13 = int_to_ptr.vmem [resolvable:$true] %s15_s13 }
   0x3   :  { %p135_p1 = scmp.lt.u32.totalorder %s131_s16, %s241_s0 }
   0x5   :  { %p137_p2 = pnand %p135_p1, %p132_p0 }
   0x7   :  { %140 = shalt.err (!%p137_p2)
}
   0x8   :  { %s141_s21 = scalar_lea.vmem %s16_s13, 256  ;;  %p146_p4 = scmp.lt.s32.totalorder %s16_s13, %s16_s13 }
   0x9   :  { %p142_p3 = scmp.ne.s32.totalorder %s16_s13, %s141_s21  ;;  %p147_p5 = scmp.lt.s32.totalorder %s141_s21, %s141_s21 }
   0xb   :  { %p148_p6 = por %p147_p5, %p146_p4 }
   0xd   :  { %p149_p7 = pnand %p148_p6, %p142_p3 }
   0xf   :  { %152 = shalt.err (!%p149_p7)
}
  0x10   :  { %s180_s22 = smov 128   ;;  %s181_s23 = smov 8  }
  0x11   :  { %21 = dma.hbm_to_vmem [thread:$0]  %s241_s0, 256, %s16_s13, [#allocation3], %s180_s22, %s180_s22, %s181_s23  }
  0x12   :  { %175 = dma.done.wait [#allocation3], 256  }
  0x13   :  { %176 = vsyncadd [#allocation3], 4294967040  ;;  %v29_v0 = vld [vmem:[#allocation2] sm:$0xff]  ;;  %vm39_vm0 = vcmask 1043456   ;;  %v30_v1 = vld [vmem:[#allocation2 + $0x8] sm:$0xff]  ;;  %v182_v12 = vmov 0   ;;  %v71_v27 = vlaneseq }
  0x14   :  { %v31_v2 = vmul.f32 %v29_v0, %v29_v0  ;;  %v32_v3 = vmul.f32 %v30_v1, %v30_v1  ;;  %125 = vset.pattern.permute.xlu1 %v182_v12  ;;  %126 = vset.pattern.permute.xlu0 %v182_v12  ;;  %v57_v13 = vld [vmem:[%s243_s2] sm:$0xf]  ;;  %v183_v25 = vmov 839922192  }
  0x15   :  { %v56_v20 = vld [vmem:[%s242_s1] sm:$0xf]  ;;  %v69_v26 = vunpack.c.l.s4 %v183_v25  ;;  %v72_v29 = vshrl.u32 %v71_v27, 7  ;;  %s184_s1 = smov [#allocation5]  }
  0x16   :  { %v35_v4 = vcombine.high %v31_v2, %v31_v2  ;;  %v40_v5 = vsel %vm39_vm0, %v31_v2, 0.0  ;;  %v36_v6 = vcombine.high %v32_v3, %v32_v3  ;;  %v45_v8 = vsel %vm39_vm0, %v32_v3, 0.0  ;;  %s107_s2 = sshll.u32 %s184_s1, 4  ;;  %s108_s2 = int_to_ptr.vmem [resolvable:$true] %s107_s2 }
  0x17   :  { %v70_v28 = vunpack.c.0.s8 %v69_v26  ;;  %s153_s29 = scalar_lea.vmem %s108_s2, 256  ;;  %p158_p9 = scmp.lt.s32.totalorder %s108_s2, %s108_s2 }
  0x18   :  { %v41_v7 = vsel %vm39_vm0, %v35_v4, 0.0  ;;  %v46_v9 = vsel %vm39_vm0, %v36_v6, 0.0  ;;  %p154_p8 = scmp.ne.s32.totalorder %s108_s2, %s153_s29  ;;  %p159_p10 = scmp.lt.s32.totalorder %s153_s29, %s153_s29 }
  0x19   :  { %v42_v10 = vadd.f32 %v41_v7, %v40_v5  ;;  %v47_v11 = vadd.f32 %v46_v9, %v45_v8  ;;  %v73_v30 = vsub.s32 %v70_v28, %v72_v29 }
  0x1a   :  { %p160_p11 = por %p159_p10, %p158_p9 }
  0x1b   :  { %43 = vadd.xlane.f32.xlu0 %v42_v10 }
  0x1c   :  { %p161_p12 = pnand %p160_p11, %p154_p8 }
  0x1f   :  { %48 = vadd.xlane.f32.xlu0 %v47_v11 }
  0x35   :  { %88 = vperm.xlu0 %126, %v57_v13  }
  0xa8   :  { %v44_v14 = vpop.xlane.xlu0 %43 }
  0xa9   :  { %v50_v15 = vmul.f32 0.00390625, %v44_v14 }
  0xab   :  { %v52_v16 = vadd.f32 1e-06, %v50_v15 }
  0xac   :  { %v49_v17 = vpop.xlane.xlu0 %48 }
  0xad   :  { %127 = vrsqrt.f32 %v52_v16  ;;  %v51_v18 = vmul.f32 0.00390625, %v49_v17 }
  0xaf   :  { %v53_v19 = vadd.f32 1e-06, %v51_v18 }
  0xb1   :  { %129 = vrsqrt.f32 %v53_v19 }
  0xb4   :  { %v89_v31 = vpop.permute.xlu0 %88 }
  0xb5   :  { %v96_v34 = vrot.slane %v89_v31, %v73_v30 }
  0xb7   :  { %v128_v21 = vpop.eup %127 }
  0xb8   :  { %v58_v22 = vmul.f32 %v128_v21, %v56_v20 }
  0xba   :  { %62 = vperm.xlu1 %125, %v58_v22  }
  0xbb   :  { %v130_v23 = vpop.eup %129 }
  0xbc   :  { %v59_v24 = vmul.f32 %v130_v23, %v56_v20 }
  0xbe   :  { %66 = vperm.xlu1 %125, %v59_v24  }
 0x139   :  { %v63_v32 = vpop.permute.xlu1 %62 }
 0x13a   :  { %v74_v33 = vrot.slane %v63_v32, %v73_v30 }
 0x13c   :  { %v84_v35 = vmul.f32 %v74_v33, %v29_v0 }
 0x13d   :  { %v67_v36 = vpop.permute.xlu1 %66 }
 0x13e   :  { %v98_v37 = vadd.f32 %v96_v34, %v84_v35  ;;  %v81_v38 = vrot.slane %v67_v36, %v73_v30 }
 0x140   :  { %100 = vst [vmem:[#allocation5] sm:$0xff] %v98_v37  ;;  %v85_v39 = vmul.f32 %v81_v38, %v30_v1 }
 0x142   :  { %v99_v40 = vadd.f32 %v96_v34, %v85_v39 }
 0x144   :  { %101 = vst [vmem:[#allocation5 + $0x8] sm:$0xff] %v99_v40 }
 0x145   :  { %164 = shalt.err (!%p161_p12)
}
 0x146   :  { %s165_s5 = scalar_lea.hbm %s244_s3, 256 }
 0x147   :  { %p166_p13 = scmp.ne.s32.totalorder %s244_s3, %s165_s5  ;;  %p169_p0 = scmp.lt.u32.totalorder %s165_s5, %s244_s3 }
 0x149   :  { %p171_p1 = pnand %p169_p0, %p166_p13 }
 0x14b   :  { %174 = shalt.err (!%p171_p1)
}
 0x14c   :  { %113 = dma.vmem_to_hbm [thread:$0]  %s108_s2, 256, %s244_s3, [#allocation4], %s180_s22, %s180_s22, %s181_s23  }
 0x14d   :  { %177 = dma.done.wait [#allocation4], 256  }
 0x14e   :  { %178 = vsyncadd [#allocation4], 4294967040 }
 0x14f   :  { %117 = vsyncpa [#allocation3], 1 }
 0x150   :  { %118 = vsyncpa [#allocation4], 1 }

</bundles_post_ra>
